<compile_context>
chip_gen: v7x
topology: tpu7x:2x2x1
jax: 0.10.0
libtpu: 0.0.40
codegen_flags: <defaults>
</compile_context>

<pallas_src>
import jax
import jax.numpy as jnp
from jax.experimental import pallas as pl
from jax.experimental.pallas import tpu as pltpu

_LANE = 128
_SUBLANE = 8
_MIB = 1 << 20


def _swish_kernel(x_ref, o_ref):
    # Swish(x) = x * sigmoid(beta * x), beta = 1.0 (module default).
    x = x_ref[...].astype(jnp.float32)
    o_ref[...] = (x * jax.nn.sigmoid(x)).astype(o_ref.dtype)


def _tpu_generation():
    """Best-effort TPU generation detection (never raises)."""
    try:
        kind = jax.devices()[0].device_kind.lower()
    except Exception:
        return "unknown"
    if "v5 lite" in kind or "v5e" in kind or "v5lite" in kind:
        return "v5e"
    if "v6" in kind:
        return "v6e"
    if "v7" in kind or "tpu7" in kind:
        return "v7x"
    return "unknown"


def _generation_config(gen):
    """Returns (target block bytes, input buffer depth, min grid steps, vmem cap)."""
    if gen == "v7x":
        # 2 TCs @ ~3.2 TB/s: a 2 MiB block streams in well under 1 us, so the
        # ~0.35 us/step overhead is a big tax -> 6 MiB tiles + 3-deep input
        # buffering; force >=4 steps so each core gets >=2 (keeps per-core
        # pipelining).  Physical VMEM is only 64 MiB -> cap the limit at 48.
        return 6 * _MIB, 3, 4, 48 * _MIB
    if gen == "v5e":
        # ~0.82 TB/s: per-step overhead already <10% at 2 MiB; stay small and
        # well inside the 16 MiB scoped default (explicit limit still passed).
        return 2 * _MIB, 2, 1, 96 * _MIB
    # v6e / unknown: 4 MiB tiles (measured mem-bound roofline 85% -> 86%).
    return 4 * _MIB, 2, 1, 96 * _MIB


def _swish_2d(x2d, *, block_bytes, in_buffers, min_grid, vmem_cap,
              donate_input=False):
    """Runs the Swish kernel over a (rows, W) slab."""
    rows, W = x2d.shape
    dtype = x2d.dtype
    itemsize = jnp.dtype(dtype).itemsize
    n = rows * W

    # ~block_bytes per tile, rounded to the 8-row sublane granularity.  A
    # partial final block (rows % block_rows != 0) is masked by Pallas.
    block_rows = max(_SUBLANE,
                     (block_bytes // (W * itemsize)) // _SUBLANE * _SUBLANE)
    block_rows = min(block_rows, rows)
    grid_size = pl.cdiv(rows, block_rows)

    # On v7x ensure >=2 steps per TensorCore (>=4 total) when rows allow, so
    # each core still double-buffers.  Skipped on single-TC v5e/v6e.
    if grid_size < min_grid and rows >= min_grid * _SUBLANE:
        block_rows = min(block_rows,
                         max(_SUBLANE, (rows // min_grid) // _SUBLANE * _SUBLANE))
        grid_size = pl.cdiv(rows, block_rows)

    tile_bytes = block_rows * W * itemsize
    # in_buffers input copies + 2 double-buffered output copies, plus headroom;
    # never below ~default, never above the per-generation cap.
    vmem_limit = int(min(vmem_cap,
                         max(16 * _MIB,
                             (in_buffers + 2) * tile_bytes + 2 * _MIB)))

    in_spec_kwargs = {}
    if in_buffers != 2:
        in_spec_kwargs["pipeline_mode"] = pl.Buffered(in_buffers)

    call_kwargs = {}
    if donate_input:
        # Halves HBM footprint / allocator pressure for big activations when
        # the caller no longer needs x (traffic itself is unchanged).
        call_kwargs["input_output_aliases"] = {0: 0}

    return pl.pallas_call(
        _swish_kernel,
        out_shape=jax.ShapeDtypeStruct((rows, W), dtype),
        grid_spec=pltpu.PrefetchScalarGridSpec(
            num_scalar_prefetch=0,
            grid=(grid_size,),
            in_specs=[pl.BlockSpec((block_rows, W), lambda i: (i, 0),
                                   **in_spec_kwargs)],
            out_specs=pl.BlockSpec((block_rows, W), lambda i: (i, 0)),
        ),
        compiler_params=pltpu.CompilerParams(
            dimension_semantics=("parallel",),
            vmem_limit_bytes=vmem_limit,
        ),
        cost_estimate=pl.CostEstimate(
            flops=4 * n,
            transcendentals=n,
            bytes_accessed=2 * n * itemsize,
        ),
        **call_kwargs,
    )(x2d)


def swish_pallas(x, *, donate_input=False):
    """Elementwise Swish via Pallas. Works for any shape / float dtype."""
    orig_shape = x.shape
    dtype = x.dtype
    n = x.size
    if n == 0:
        return x

    gen = _tpu_generation()
    block_bytes, in_buffers, min_grid, vmem_cap = _generation_config(gen)
    launch = lambda x2d: _swish_2d(
        x2d, block_bytes=block_bytes, in_buffers=in_buffers,
        min_grid=min_grid, vmem_cap=vmem_cap, donate_input=donate_input)

    # Pick the lane-dense slab width W.  Prefer the natural trailing dim when
    # it is already a multiple of 128 (reshape stays a pure dim-collapse),
    # otherwise the widest padding-free candidate.
    last = orig_shape[-1] if len(orig_shape) else 1
    W = None
    if last % _LANE == 0:
        W = last
    else:
        for cand in (8192, 4096, 2048, 1024, 512, 256, _LANE):
            if n % cand == 0:
                W = cand
                break

    x_flat = jnp.ravel(x)

    if W is not None:
        out_flat = launch(x_flat.reshape(n // W, W)).reshape(-1)
    elif n < _LANE:
        # Tiny array: a single full-extent block (no (8,128) constraint when
        # block_shape equals the full array dims).
        out_flat = launch(x_flat.reshape(1, n)).reshape(-1)
    else:
        # n not a multiple of 128: run the kernel on the 128-aligned prefix
        # and compute the (<128-element) tail with plain jnp.  This avoids the
        # full-tensor pad + slice HBM passes of the previous version.
        n_main = (n // _LANE) * _LANE
        main = launch(x_flat[:n_main].reshape(n_main // _LANE, _LANE))
        tail = x_flat[n_main:].astype(jnp.float32)
        tail_out = (tail * jax.nn.sigmoid(tail)).astype(dtype)
        out_flat = jnp.concatenate([main.reshape(-1), tail_out])

    return out_flat.reshape(orig_shape)


if __name__ == "__main__":
    key = jax.random.PRNGKey(0)

    # Shape consistent with a typical NCHW conv-activation input.
    x = jax.random.normal(key, (2, 4, 16, 16), dtype=jnp.float32)
    y = swish_pallas(x)
    jax.block_until_ready(y)
    y_ref = x * jax.nn.sigmoid(x)
    assert y.shape == x.shape and y.dtype == x.dtype
    assert jnp.allclose(y, y_ref, atol=1e-6, rtol=1e-6)

    # Tiny non-128-aligned size (single full-block path).
    x2 = jax.random.normal(jax.random.PRNGKey(1), (3, 5, 7), dtype=jnp.float32)
    y2 = swish_pallas(x2)
    jax.block_until_ready(y2)
    assert jnp.allclose(y2, x2 * jax.nn.sigmoid(x2), atol=1e-6, rtol=1e-6)

    # Larger non-128-aligned size (aligned-prefix + jnp-tail path).
    x3 = jax.random.normal(jax.random.PRNGKey(2), (5, 131), dtype=jnp.float32)
    y3 = swish_pallas(x3)
    jax.block_until_ready(y3)
    assert jnp.allclose(y3, x3 * jax.nn.sigmoid(x3), atol=1e-6, rtol=1e-6)

    # bf16 path (kernel computes in f32, casts on store).
    x4 = jax.random.normal(jax.random.PRNGKey(3), (4, 8, 256), dtype=jnp.bfloat16)
    y4 = swish_pallas(x4)
    jax.block_until_ready(y4)
    x4f = x4.astype(jnp.float32)
    y4_ref = (x4f * jax.nn.sigmoid(x4f)).astype(jnp.bfloat16)
    assert y4.dtype == jnp.bfloat16
    assert jnp.allclose(y4.astype(jnp.float32), y4_ref.astype(jnp.float32),
                        atol=1e-2, rtol=1e-2)

    print("KERNEL_OK")
</pallas_src>

<mosaic_0001>
module attributes {stable_mosaic.version = 11 : i64} {
  func.func @_swish_kernel(%arg0: i32, %arg1: memref<1x2048xf32, #tpu.memory_space<vmem>>, %arg2: memref<1x2048xf32, #tpu.memory_space<vmem>>) attributes {dimension_semantics = [#tpu.dimension_semantics<parallel>], iteration_bounds = array<i64: 1>, scalar_prefetch = 0 : i64, scratch_operands = 0 : i64, tpu.core_type = #tpu.core_type<tc>, window_params = [{transform_indices = @transform_0, window_bounds = array<i64: 1, 2048>}, {transform_indices = @transform_1, window_bounds = array<i64: 1, 2048>}]} {
    %c0 = arith.constant 0 : index
    %c0_0 = arith.constant 0 : index
    %0 = vector.load %arg1[%c0, %c0_0] : memref<1x2048xf32, #tpu.memory_space<vmem>>, vector<1x2048xf32>
    %1 = arith.negf %0 : vector<1x2048xf32>
    %2 = math.exp %1 : vector<1x2048xf32>
    %cst = arith.constant 1.000000e+00 : f32
    %3 = vector.broadcast %cst : f32 to vector<1x2048xf32>
    %4 = arith.addf %3, %2 : vector<1x2048xf32>
    %5 = arith.divf %3, %4 : vector<1x2048xf32>
    %6 = arith.mulf %0, %5 : vector<1x2048xf32>
    %c0_1 = arith.constant 0 : index
    %c0_2 = arith.constant 0 : index
    %7 = vector.load %arg2[%c0_1, %c0_2] : memref<1x2048xf32, #tpu.memory_space<vmem>>, vector<1x2048xf32>
    tpu.vector_store %arg2[%c0_1, %c0_2], %6 {strides = array<i32>} : memref<1x2048xf32, #tpu.memory_space<vmem>>, vector<1x2048xf32>,
    return
  }
  func.func @transform_0(%arg0: i32) -> (i32, i32) {
    %c0_i32 = arith.constant 0 : i32
    %c0_i32_0 = arith.constant 0 : i32
    return %arg0, %c0_i32 : i32, i32
  }
  func.func @transform_1(%arg0: i32) -> (i32, i32) {
    %c0_i32 = arith.constant 0 : i32
    %c0_i32_0 = arith.constant 0 : i32
    return %arg0, %c0_i32 : i32, i32
  }
}

</mosaic_0001>

<bundles_post_ra>
// kernel: tpu_custom_call.1
= control target key start
LH: loop header
LB: loop body
LE: loop exit
PB: predicated region body
PF: predicated region fallthrough
CT: control target
= control target key end

     0   :  { %6 = vsyncpa [#allocation3], 0  ;;  %s150_s0 = inlined_call_operand.hbm [shape: f32[1,2048], index: 0, kind: input, shape index: {}]   ;;  %s151_s1 = inlined_call_operand.hbm [shape: f32[1,2048], index: 1, kind: output, shape index: {}]  }
   0x1   :  { %7 = vsyncpa [#allocation4], 0  ;;  %s114_s6 = smov [#allocation2]   ;;  %s66_s10 = scalar_lea.hbm %s150_s0, 256 }
   0x2   :  { %s14_s7 = sshll.u32 %s114_s6, 4  ;;  %p67_p0 = scmp.ne.s32.totalorder %s150_s0, %s66_s10  ;;  %s15_s7 = int_to_ptr.vmem [resolvable:$true] %s14_s7 }
   0x3   :  { %p70_p1 = scmp.lt.u32.totalorder %s66_s10, %s150_s0 }
   0x5   :  { %p72_p2 = pnand %p70_p1, %p67_p0 }
   0x7   :  { %75 = shalt.err (!%p72_p2)
}
   0x8   :  { %s76_s15 = scalar_lea.vmem %s15_s7, 256  ;;  %p81_p4 = scmp.lt.s32.totalorder %s15_s7, %s15_s7 }
   0x9   :  { %p77_p3 = scmp.ne.s32.totalorder %s15_s7, %s76_s15  ;;  %p82_p5 = scmp.lt.s32.totalorder %s76_s15, %s76_s15 }
   0xb   :  { %p83_p6 = por %p82_p5, %p81_p4 }
   0xd   :  { %p84_p7 = pnand %p83_p6, %p77_p3 }
   0xf   :  { %87 = shalt.err (!%p84_p7)
}
  0x10   :  { %17 = dma.hbm_to_vmem [thread:$0]  %s150_s0, 256, %s15_s7, [#allocation3]  }
  0x11   :  { %110 = dma.done.wait [#allocation3], 256  }
  0x12   :  { %111 = vsyncadd [#allocation3], 4294967040  ;;  %v21_v0 = vld [vmem:[#allocation2] sm:$0xff]  ;;  %v22_v1 = vld [vmem:[#allocation2 + $0x8] sm:$0xff]  ;;  %s115_s18 = smov [#allocation5]  }
  0x13   :  { %v54_v2 = vmul.f32 -1.442695, %v21_v0  ;;  %v55_v3 = vmul.f32 -1.442695, %v22_v1  ;;  %s45_s19 = sshll.u32 %s115_s18, 4  ;;  %s46_s19 = int_to_ptr.vmem [resolvable:$true] %s45_s19 }
  0x14   :  { %s88_s0 = scalar_lea.vmem %s46_s19, 256  ;;  %p93_p9 = scmp.lt.s32.totalorder %s46_s19, %s46_s19 }
  0x15   :  { %58 = vpow2.f32 %v54_v2  ;;  %p89_p8 = scmp.ne.s32.totalorder %s46_s19, %s88_s0  ;;  %p94_p10 = scmp.lt.s32.totalorder %s88_s0, %s88_s0 }
  0x16   :  { %60 = vpow2.f32 %v55_v3 }
  0x17   :  { %p95_p11 = por %p94_p10, %p93_p9 }
  0x19   :  { %p96_p12 = pnand %p95_p11, %p89_p8 }
  0x1f   :  { %v59_v4 = vpop.eup %58 }
  0x20   :  { %v61_v5 = vpop.eup %60  ;;  %v29_v6 = vadd.f32 1.0, %v59_v4 }
  0x21   :  { %v30_v7 = vadd.f32 1.0, %v61_v5 }
  0x22   :  { %62 = vrcp.f32 %v29_v6 }
  0x23   :  { %64 = vrcp.f32 %v30_v7 }
  0x2c   :  { %v63_v8 = vpop.eup %62 }
  0x2d   :  { %v65_v9 = vpop.eup %64  ;;  %v35_v10 = vmul.f32 %v63_v8, %v21_v0 }
  0x2e   :  { %v36_v11 = vmul.f32 %v65_v9, %v22_v1 }
  0x2f   :  { %37 = vst [vmem:[#allocation5] sm:$0xff] %v35_v10 }
  0x30   :  { %38 = vst [vmem:[#allocation5 + $0x8] sm:$0xff] %v36_v11 }
  0x31   :  { %99 = shalt.err (!%p96_p12)
}
  0x32   :  { %s100_s22 = scalar_lea.hbm %s151_s1, 256 }
  0x33   :  { %p101_p13 = scmp.ne.s32.totalorder %s151_s1, %s100_s22  ;;  %p104_p0 = scmp.lt.u32.totalorder %s100_s22, %s151_s1 }
  0x35   :  { %p106_p1 = pnand %p104_p0, %p101_p13 }
  0x37   :  { %109 = shalt.err (!%p106_p1)
}
  0x38   :  { %48 = dma.vmem_to_hbm [thread:$0]  %s46_s19, 256, %s151_s1, [#allocation4]  }
  0x39   :  { %112 = dma.done.wait [#allocation4], 256  }
  0x3a   :  { %113 = vsyncadd [#allocation4], 4294967040 }
  0x3b   :  { %52 = vsyncpa [#allocation3], 1 }
  0x3c   :  { %53 = vsyncpa [#allocation4], 1 }

</bundles_post_ra>
